<compile_context>
chip_gen: v7x
topology: tpu7x:2x2x1
jax: 0.10.0
libtpu: 0.0.40
codegen_flags: <defaults>
</compile_context>

<pallas_src>
import jax
import jax.numpy as jnp
from jax.experimental import pallas as pl
from jax.experimental.pallas import tpu as pltpu

SEQ = 8       # seq_len
BATCH = 2     # real batch
BP = 8        # batch padded to a full sublane tile
F_IN = 2      # input feature dim
H1 = 32       # linear1 out / lstm in
H2 = 64       # lstm hidden (real)
HP = 128      # per-gate lane padding: one full 128-lane group per gate
G4 = 4 * HP   # 512 = padded gate width
H3 = 32       # linear2 out
NEG_SLOPE = 0.1

# Packed-parameter buffer row layout (all block starts are multiples of 8).
R_WIH = 0            # rows [0:32)    : wih  (H1, G4)
R_WHH = 32           # rows [32:96)   : whh  (H2, G4)   (no K-row padding)
R_BG = 96            # row  96        : b_ih + b_hh, gate-padded (1, G4)
R_W1 = 104           # rows [104:106) : w1   (F_IN, H1) in lanes [0:H1)
R_B1 = 112           # row  112       : b1   in lanes [0:H1)
R_B2 = 120           # row  120       : b2   in lanes [0:H3)
R_W2 = 128           # rows [128:192) : w2   (H2, H3)   in lanes [0:H3)
R_ROWS = 192


def _leaky(x):
    return jnp.where(x >= 0, x, NEG_SLOPE * x)


def encoder_kernel(x_ref, p_ref, out_ref, pre_ref):
    # x:   (SEQ*BP, F_IN)      p: (R_ROWS, G4) packed params
    # out: (BP, H3)            pre_ref: VMEM scratch (SEQ*BP, G4)
    SB = x_ref.shape[0]
    S = SB // BP

    # ---- hoisted, non-recurrent projections (off the serial chain) ----------
    w1 = p_ref[R_W1:R_W1 + F_IN, 0:H1]                      # (F_IN, H1)
    b1 = p_ref[R_B1:R_B1 + 1, 0:H1]                         # (1, H1)
    wih = p_ref[R_WIH:R_WIH + H1, :]                        # (H1, G4)
    bg = p_ref[R_BG:R_BG + 1, :]                            # (1, G4)

    z = _leaky(jnp.dot(x_ref[...], w1,
                       preferred_element_type=jnp.float32) + b1)    # (S*BP, H1)
    pre_ref[...] = jnp.dot(z, wih,
                           preferred_element_type=jnp.float32) + bg  # (S*BP, G4)

    # Loop-invariant recurrent weight, loaded once (K = 64, not 128).
    whh = p_ref[R_WHH:R_WHH + H2, :]                        # (H2, G4)

    # ---- LSTM recurrence: fully unrolled; only h[:, :64] @ whh on the chain --
    h = jnp.zeros((BP, HP), jnp.float32)    # lanes [H2:HP) stay exactly 0
    c = jnp.zeros((BP, HP), jnp.float32)
    for t in range(S):                      # static -> full unroll, static slices
        g = pre_ref[t * BP:(t + 1) * BP, :] + jnp.dot(
            h[:, :H2], whh, preferred_element_type=jnp.float32)      # (BP, G4)
        # Gate order (after prep-time permutation): i, f, o, g.
        # One wide sigmoid over the first three 128-lane groups, tanh on the last.
        s = jax.nn.sigmoid(g[:, 0:3 * HP])                            # (BP, 3*HP)
        i_g = s[:, 0 * HP:1 * HP]
        f_g = s[:, 1 * HP:2 * HP]
        o_g = s[:, 2 * HP:3 * HP]
        g_g = jnp.tanh(g[:, 3 * HP:4 * HP])
        c = f_g * c + i_g * g_g
        h = o_g * jnp.tanh(c)

    # ---- output projection ---------------------------------------------------
    w2 = p_ref[R_W2:R_W2 + H2, 0:H3]                        # (H2, H3)
    b2 = p_ref[R_B2:R_B2 + 1, 0:H3]                         # (1, H3)
    out_ref[...] = _leaky(
        jnp.dot(h[:, :H2], w2, preferred_element_type=jnp.float32) + b2)


def init_params(key):
    """Deterministic PyTorch-style uniform(-1/sqrt(fan_in), 1/sqrt(fan_in)) init."""
    ks = jax.random.split(key, 8)

    def u(k, shape, fan_in):
        bound = 1.0 / jnp.sqrt(jnp.float32(fan_in))
        return jax.random.uniform(k, shape, jnp.float32, -bound, bound)

    # nn.Linear(2, 32): weight (32, 2), bias (32,)
    w1 = u(ks[0], (H1, F_IN), F_IN)
    b1 = u(ks[1], (H1,), F_IN)
    # nn.LSTM(32, 64): weight_ih (256, 32), weight_hh (256, 64), bias_ih/bias_hh (256,)
    wih = u(ks[2], (4 * H2, H1), H2)
    whh = u(ks[3], (4 * H2, H2), H2)
    bih = u(ks[4], (4 * H2,), H2)
    bhh = u(ks[5], (4 * H2,), H2)
    # nn.Linear(64, 32): weight (32, 64), bias (32,)
    w2 = u(ks[6], (H3, H2), H2)
    b2 = u(ks[7], (H3,), H2)
    return dict(w1=w1, b1=b1, wih=wih, whh=whh, bih=bih, bhh=bhh, w2=w2, b2=b2)


def prepare_params(p):
    """One-time weight prep (outside the per-call path):
      * transpose for x @ W layouts,
      * fold the two LSTM biases,
      * reorder gate blocks [i,f,g,o] -> [i,f,o,g] and pad each 64-wide gate to
        a 128-lane group (real data at lane offset 0, ZEROS elsewhere — padded
        columns must be exactly zero so padded h/c lanes stay benign),
      * pack everything into one contiguous (192, 512) f32 buffer so the kernel
        takes a single parameter DMA."""
    def pack_gates(w_t):                        # (K, 4*H2) torch col order [i,f,g,o]
        k = w_t.shape[0]
        w4 = w_t.reshape(k, 4, H2)[:, [0, 1, 3, 2], :]          # -> [i, f, o, g]
        w4 = jnp.pad(w4, ((0, 0), (0, 0), (0, HP - H2)))        # zero-pad lanes
        return w4.reshape(k, G4)

    wih_p = pack_gates(p["wih"].T)                              # (H1, G4)
    whh_p = pack_gates(p["whh"].T)                              # (H2, G4) — no K padding
    bg_p = pack_gates((p["bih"] + p["bhh"]).reshape(1, 4 * H2))  # (1, G4)

    P = jnp.zeros((R_ROWS, G4), jnp.float32)
    P = P.at[R_WIH:R_WIH + H1, :].set(wih_p)
    P = P.at[R_WHH:R_WHH + H2, :].set(whh_p)
    P = P.at[R_BG, :].set(bg_p[0])
    P = P.at[R_W1:R_W1 + F_IN, :H1].set(p["w1"].T)
    P = P.at[R_B1, :H1].set(p["b1"])
    P = P.at[R_B2, :H3].set(p["b2"])
    P = P.at[R_W2:R_W2 + H2, :H3].set(p["w2"].T)
    return P


@jax.jit
def encoder_forward(hist, packed):
    # hist: (S, B, F_IN) seq-major.  Pad batch to BP=8 so every timestep owns a
    # full 8-row sublane tile; padded rows are ZERO (finite everywhere, never read
    # back out).  Flatten time*batch so the kernel does clean 2-D matmuls and
    # tile-aligned static sublane slices.
    S, B, F = hist.shape
    x_pad = jnp.zeros((S, BP, F), hist.dtype).at[:, :B, :].set(hist)
    x2d = x_pad.reshape(S * BP, F)

    vmem = pl.BlockSpec(memory_space=pltpu.MemorySpace.VMEM)
    # Gridless single invocation: total resident data < 0.5 MiB, far under VMEM
    # on every generation (v5e/v6e 128 MiB, v7x 64 MiB).
    # TODO(synk): for large real batches, add a leading "parallel" grid axis over
    # batch chunks (dimension_semantics=("parallel",)) to use both v7x TensorCores,
    # and keep the packed weights resident across calls (cross-call prefetch).
    out = pl.pallas_call(
        encoder_kernel,
        out_shape=jax.ShapeDtypeStruct((BP, H3), jnp.float32),
        in_specs=[vmem, vmem],
        out_specs=vmem,
        scratch_shapes=[pltpu.VMEM((S * BP, G4), jnp.float32)],
    )(x2d, packed)
    return out[:B]


def encoder_reference(hist, p):
    """Pure-JAX reference matching PyTorch semantics (for validation)."""
    z = _leaky(jnp.einsum("sbf,hf->sbh", hist, p["w1"]) + p["b1"])   # (S,B,32)
    h = jnp.zeros((hist.shape[1], H2), jnp.float32)
    c = jnp.zeros((hist.shape[1], H2), jnp.float32)
    bg = p["bih"] + p["bhh"]
    for t in range(hist.shape[0]):
        g = z[t] @ p["wih"].T + h @ p["whh"].T + bg
        i_g = jax.nn.sigmoid(g[:, 0 * H2:1 * H2])
        f_g = jax.nn.sigmoid(g[:, 1 * H2:2 * H2])
        g_g = jnp.tanh(g[:, 2 * H2:3 * H2])
        o_g = jax.nn.sigmoid(g[:, 3 * H2:4 * H2])
        c = f_g * c + i_g * g_g
        h = o_g * jnp.tanh(c)
    return _leaky(h @ p["w2"].T + p["b2"])


if __name__ == "__main__":
    key = jax.random.PRNGKey(0)
    k_in, k_par = jax.random.split(key)

    # hist: (seq_len=8, batch=2, features=2), nn.LSTM batch_first=False layout
    hist = jax.random.normal(k_in, (SEQ, BATCH, F_IN), jnp.float32)
    params = init_params(k_par)
    packed = prepare_params(params)            # one-time weight prep + packing

    out = encoder_forward(hist, packed)
    out = jax.block_until_ready(out)

    ref = encoder_reference(hist, params)
    assert out.shape == (BATCH, H3), out.shape
    assert jnp.allclose(out, ref, atol=1e-5, rtol=1e-5), "mismatch vs JAX reference"

    print("KERNEL_OK")
</pallas_src>

<mosaic_0001>
module attributes {stable_mosaic.version = 11 : i64} {
  func.func @encoder_kernel(%arg0: memref<64x2xf32, #tpu.memory_space<vmem>>, %arg1: memref<192x512xf32, #tpu.memory_space<vmem>>, %arg2: memref<8x32xf32, #tpu.memory_space<vmem>>, %arg3: memref<64x512xf32, #tpu.memory_space<vmem>>) attributes {dimension_semantics = [], scalar_prefetch = 0 : i64, scratch_operands = 1 : i64, tpu.core_type = #tpu.core_type<tc>} {
    %c104 = arith.constant 104 : index
    %c0 = arith.constant 0 : index
    %0 = vector.load %arg1[%c104, %c0] : memref<192x512xf32, #tpu.memory_space<vmem>>, vector<2x32xf32>
    %c112 = arith.constant 112 : index
    %c0_0 = arith.constant 0 : index
    %1 = vector.load %arg1[%c112, %c0_0] : memref<192x512xf32, #tpu.memory_space<vmem>>, vector<1x32xf32>
    %c0_1 = arith.constant 0 : index
    %c0_2 = arith.constant 0 : index
    %2 = vector.load %arg1[%c0_1, %c0_2] : memref<192x512xf32, #tpu.memory_space<vmem>>, vector<32x512xf32>
    %c96 = arith.constant 96 : index
    %c0_3 = arith.constant 0 : index
    %3 = vector.load %arg1[%c96, %c0_3] : memref<192x512xf32, #tpu.memory_space<vmem>>, vector<1x512xf32>
    %c0_4 = arith.constant 0 : index
    %c0_5 = arith.constant 0 : index
    %4 = vector.load %arg0[%c0_4, %c0_5] : memref<64x2xf32, #tpu.memory_space<vmem>>, vector<64x2xf32>
    %cst = arith.constant dense<0.000000e+00> : vector<64x32xf32>
    %5 = tpu.matmul %4, %0, %cst {dimension_numbers = #tpu.dot_dimension_numbers<[1], [0], [0], [1], [0, 0, 1, 1], [], []>} : vector<64x2xf32>, vector<2x32xf32>, vector<64x32xf32> -> vector<64x32xf32>
    %6 = vector.broadcast %1 : vector<1x32xf32> to vector<64x32xf32>
    %7 = arith.addf %5, %6 : vector<64x32xf32>
    %cst_6 = arith.constant 0.000000e+00 : f32
    %8 = vector.broadcast %cst_6 : f32 to vector<64x32xf32>
    %9 = arith.cmpf oge, %7, %8 : vector<64x32xf32>
    %cst_7 = arith.constant 1.000000e-01 : f32
    %10 = vector.broadcast %cst_7 : f32 to vector<64x32xf32>
    %11 = arith.mulf %10, %7 : vector<64x32xf32>
    %12 = arith.select %9, %7, %11 : vector<64x32xi1>, vector<64x32xf32>
    %cst_8 = arith.constant dense<0.000000e+00> : vector<64x512xf32>
    %13 = tpu.matmul %12, %2, %cst_8 {dimension_numbers = #tpu.dot_dimension_numbers<[1], [0], [0], [1], [0, 0, 1, 1], [], []>} : vector<64x32xf32>, vector<32x512xf32>, vector<64x512xf32> -> vector<64x512xf32>
    %14 = vector.broadcast %3 : vector<1x512xf32> to vector<64x512xf32>
    %15 = arith.addf %13, %14 : vector<64x512xf32>
    %c0_9 = arith.constant 0 : index
    %c0_10 = arith.constant 0 : index
    %16 = vector.load %arg3[%c0_9, %c0_10] : memref<64x512xf32, #tpu.memory_space<vmem>>, vector<64x512xf32>
    tpu.vector_store %arg3[%c0_9, %c0_10], %15 {strides = array<i32>} : memref<64x512xf32, #tpu.memory_space<vmem>>, vector<64x512xf32>,
    %c32 = arith.constant 32 : index
    %c0_11 = arith.constant 0 : index
    %17 = vector.load %arg1[%c32, %c0_11] : memref<192x512xf32, #tpu.memory_space<vmem>>, vector<64x512xf32>
    %cst_12 = arith.constant 0.000000e+00 : f32
    %18 = vector.broadcast %cst_12 : f32 to vector<8x128xf32>
    %cst_13 = arith.constant 0.000000e+00 : f32
    %19 = vector.broadcast %cst_13 : f32 to vector<8x128xf32>
    %c0_14 = arith.constant 0 : index
    %c0_15 = arith.constant 0 : index
    %20 = vector.load %arg3[%c0_14, %c0_15] : memref<64x512xf32, #tpu.memory_space<vmem>>, vector<8x512xf32>
    %21 = vector.extract_strided_slice %18 {offsets = [0, 0], sizes = [8, 64], strides = [1, 1]} : vector<8x128xf32> to vector<8x64xf32>
    %cst_16 = arith.constant dense<0.000000e+00> : vector<8x512xf32>
    %22 = tpu.matmul %21, %17, %cst_16 {dimension_numbers = #tpu.dot_dimension_numbers<[1], [0], [0], [1], [0, 0, 1, 1], [], []>} : vector<8x64xf32>, vector<64x512xf32>, vector<8x512xf32> -> vector<8x512xf32>
    %23 = arith.addf %20, %22 : vector<8x512xf32>
    %24 = vector.extract_strided_slice %23 {offsets = [0, 0], sizes = [8, 384], strides = [1, 1]} : vector<8x512xf32> to vector<8x384xf32>
    %25 = arith.negf %24 : vector<8x384xf32>
    %26 = math.exp %25 : vector<8x384xf32>
    %cst_17 = arith.constant 1.000000e+00 : f32
    %27 = vector.broadcast %cst_17 : f32 to vector<8x384xf32>
    %28 = arith.addf %27, %26 : vector<8x384xf32>
    %29 = arith.divf %27, %28 : vector<8x384xf32>
    %30 = vector.extract_strided_slice %29 {offsets = [0, 0], sizes = [8, 128], strides = [1, 1]} : vector<8x384xf32> to vector<8x128xf32>
    %31 = vector.extract_strided_slice %29 {offsets = [0, 128], sizes = [8, 128], strides = [1, 1]} : vector<8x384xf32> to vector<8x128xf32>
    %32 = vector.extract_strided_slice %29 {offsets = [0, 256], sizes = [8, 128], strides = [1, 1]} : vector<8x384xf32> to vector<8x128xf32>
    %33 = vector.extract_strided_slice %23 {offsets = [0, 384], sizes = [8, 128], strides = [1, 1]} : vector<8x512xf32> to vector<8x128xf32>
    %34 = math.tanh %33 : vector<8x128xf32>
    %35 = arith.mulf %31, %19 : vector<8x128xf32>
    %36 = arith.mulf %30, %34 : vector<8x128xf32>
    %37 = arith.addf %35, %36 : vector<8x128xf32>
    %38 = math.tanh %37 : vector<8x128xf32>
    %39 = arith.mulf %32, %38 : vector<8x128xf32>
    %c8 = arith.constant 8 : index
    %c0_18 = arith.constant 0 : index
    %40 = vector.load %arg3[%c8, %c0_18] : memref<64x512xf32, #tpu.memory_space<vmem>>, vector<8x512xf32>
    %41 = vector.extract_strided_slice %39 {offsets = [0, 0], sizes = [8, 64], strides = [1, 1]} : vector<8x128xf32> to vector<8x64xf32>
    %cst_19 = arith.constant dense<0.000000e+00> : vector<8x512xf32>
    %42 = tpu.matmul %41, %17, %cst_19 {dimension_numbers = #tpu.dot_dimension_numbers<[1], [0], [0], [1], [0, 0, 1, 1], [], []>} : vector<8x64xf32>, vector<64x512xf32>, vector<8x512xf32> -> vector<8x512xf32>
    %43 = arith.addf %40, %42 : vector<8x512xf32>
    %44 = vector.extract_strided_slice %43 {offsets = [0, 0], sizes = [8, 384], strides = [1, 1]} : vector<8x512xf32> to vector<8x384xf32>
    %45 = arith.negf %44 : vector<8x384xf32>
    %46 = math.exp %45 : vector<8x384xf32>
    %cst_20 = arith.constant 1.000000e+00 : f32
    %47 = vector.broadcast %cst_20 : f32 to vector<8x384xf32>
    %48 = arith.addf %47, %46 : vector<8x384xf32>
    %49 = arith.divf %47, %48 : vector<8x384xf32>
    %50 = vector.extract_strided_slice %49 {offsets = [0, 0], sizes = [8, 128], strides = [1, 1]} : vector<8x384xf32> to vector<8x128xf32>
    %51 = vector.extract_strided_slice %49 {offsets = [0, 128], sizes = [8, 128], strides = [1, 1]} : vector<8x384xf32> to vector<8x128xf32>
    %52 = vector.extract_strided_slice %49 {offsets = [0, 256], sizes = [8, 128], strides = [1, 1]} : vector<8x384xf32> to vector<8x128xf32>
    %53 = vector.extract_strided_slice %43 {offsets = [0, 384], sizes = [8, 128], strides = [1, 1]} : vector<8x512xf32> to vector<8x128xf32>
    %54 = math.tanh %53 : vector<8x128xf32>
    %55 = arith.mulf %51, %37 : vector<8x128xf32>
    %56 = arith.mulf %50, %54 : vector<8x128xf32>
    %57 = arith.addf %55, %56 : vector<8x128xf32>
    %58 = math.tanh %57 : vector<8x128xf32>
    %59 = arith.mulf %52, %58 : vector<8x128xf32>
    %c16 = arith.constant 16 : index
    %c0_21 = arith.constant 0 : index
    %60 = vector.load %arg3[%c16, %c0_21] : memref<64x512xf32, #tpu.memory_space<vmem>>, vector<8x512xf32>
    %61 = vector.extract_strided_slice %59 {offsets = [0, 0], sizes = [8, 64], strides = [1, 1]} : vector<8x128xf32> to vector<8x64xf32>
    %cst_22 = arith.constant dense<0.000000e+00> : vector<8x512xf32>
    %62 = tpu.matmul %61, %17, %cst_22 {dimension_numbers = #tpu.dot_dimension_numbers<[1], [0], [0], [1], [0, 0, 1, 1], [], []>} : vector<8x64xf32>, vector<64x512xf32>, vector<8x512xf32> -> vector<8x512xf32>
    %63 = arith.addf %60, %62 : vector<8x512xf32>
    %64 = vector.extract_strided_slice %63 {offsets = [0, 0], sizes = [8, 384], strides = [1, 1]} : vector<8x512xf32> to vector<8x384xf32>
    %65 = arith.negf %64 : vector<8x384xf32>
    %66 = math.exp %65 : vector<8x384xf32>
    %cst_23 = arith.constant 1.000000e+00 : f32
    %67 = vector.broadcast %cst_23 : f32 to vector<8x384xf32>
    %68 = arith.addf %67, %66 : vector<8x384xf32>
    %69 = arith.divf %67, %68 : vector<8x384xf32>
    %70 = vector.extract_strided_slice %69 {offsets = [0, 0], sizes = [8, 128], strides = [1, 1]} : vector<8x384xf32> to vector<8x128xf32>
    %71 = vector.extract_strided_slice %69 {offsets = [0, 128], sizes = [8, 128], strides = [1, 1]} : vector<8x384xf32> to vector<8x128xf32>
    %72 = vector.extract_strided_slice %69 {offsets = [0, 256], sizes = [8, 128], strides = [1, 1]} : vector<8x384xf32> to vector<8x128xf32>
    %73 = vector.extract_strided_slice %63 {offsets = [0, 384], sizes = [8, 128], strides = [1, 1]} : vector<8x512xf32> to vector<8x128xf32>
    %74 = math.tanh %73 : vector<8x128xf32>
    %75 = arith.mulf %71, %57 : vector<8x128xf32>
    %76 = arith.mulf %70, %74 : vector<8x128xf32>
    %77 = arith.addf %75, %76 : vector<8x128xf32>
    %78 = math.tanh %77 : vector<8x128xf32>
    %79 = arith.mulf %72, %78 : vector<8x128xf32>
    %c24 = arith.constant 24 : index
    %c0_24 = arith.constant 0 : index
    %80 = vector.load %arg3[%c24, %c0_24] : memref<64x512xf32, #tpu.memory_space<vmem>>, vector<8x512xf32>
    %81 = vector.extract_strided_slice %79 {offsets = [0, 0], sizes = [8, 64], strides = [1, 1]} : vector<8x128xf32> to vector<8x64xf32>
    %cst_25 = arith.constant dense<0.000000e+00> : vector<8x512xf32>
    %82 = tpu.matmul %81, %17, %cst_25 {dimension_numbers = #tpu.dot_dimension_numbers<[1], [0], [0], [1], [0, 0, 1, 1], [], []>} : vector<8x64xf32>, vector<64x512xf32>, vector<8x512xf32> -> vector<8x512xf32>
    %83 = arith.addf %80, %82 : vector<8x512xf32>
    %84 = vector.extract_strided_slice %83 {offsets = [0, 0], sizes = [8, 384], strides = [1, 1]} : vector<8x512xf32> to vector<8x384xf32>
    %85 = arith.negf %84 : vector<8x384xf32>
    %86 = math.exp %85 : vector<8x384xf32>
    %cst_26 = arith.constant 1.000000e+00 : f32
    %87 = vector.broadcast %cst_26 : f32 to vector<8x384xf32>
    %88 = arith.addf %87, %86 : vector<8x384xf32>
    %89 = arith.divf %87, %88 : vector<8x384xf32>
    %90 = vector.extract_strided_slice %89 {offsets = [0, 0], sizes = [8, 128], strides = [1, 1]} : vector<8x384xf32> to vector<8x128xf32>
    %91 = vector.extract_strided_slice %89 {offsets = [0, 128], sizes = [8, 128], strides = [1, 1]} : vector<8x384xf32> to vector<8x128xf32>
    %92 = vector.extract_strided_slice %89 {offsets = [0, 256], sizes = [8, 128], strides = [1, 1]} : vector<8x384xf32> to vector<8x128xf32>
    %93 = vector.extract_strided_slice %83 {offsets = [0, 384], sizes = [8, 128], strides = [1, 1]} : vector<8x512xf32> to vector<8x128xf32>
    %94 = math.tanh %93 : vector<8x128xf32>
    %95 = arith.mulf %91, %77 : vector<8x128xf32>
    %96 = arith.mulf %90, %94 : vector<8x128xf32>
    %97 = arith.addf %95, %96 : vector<8x128xf32>
    %98 = math.tanh %97 : vector<8x128xf32>
    %99 = arith.mulf %92, %98 : vector<8x128xf32>
    %c32_27 = arith.constant 32 : index
    %c0_28 = arith.constant 0 : index
    %100 = vector.load %arg3[%c32_27, %c0_28] : memref<64x512xf32, #tpu.memory_space<vmem>>, vector<8x512xf32>
    %101 = vector.extract_strided_slice %99 {offsets = [0, 0], sizes = [8, 64], strides = [1, 1]} : vector<8x128xf32> to vector<8x64xf32>
    %cst_29 = arith.constant dense<0.000000e+00> : vector<8x512xf32>
    %102 = tpu.matmul %101, %17, %cst_29 {dimension_numbers = #tpu.dot_dimension_numbers<[1], [0], [0], [1], [0, 0, 1, 1], [], []>} : vector<8x64xf32>, vector<64x512xf32>, vector<8x512xf32> -> vector<8x512xf32>
    %103 = arith.addf %100, %102 : vector<8x512xf32>
    %104 = vector.extract_strided_slice %103 {offsets = [0, 0], sizes = [8, 384], strides = [1, 1]} : vector<8x512xf32> to vector<8x384xf32>
    %105 = arith.negf %104 : vector<8x384xf32>
    %106 = math.exp %105 : vector<8x384xf32>
    %cst_30 = arith.constant 1.000000e+00 : f32
    %107 = vector.broadcast %cst_30 : f32 to vector<8x384xf32>
    %108 = arith.addf %107, %106 : vector<8x384xf32>
    %109 = arith.divf %107, %108 : vector<8x384xf32>
    %110 = vector.extract_strided_slice %109 {offsets = [0, 0], sizes = [8, 128], strides = [1, 1]} : vector<8x384xf32> to vector<8x128xf32>
    %111 = vector.extract_strided_slice %109 {offsets = [0, 128], sizes = [8, 128], strides = [1, 1]} : vector<8x384xf32> to vector<8x128xf32>
    %112 = vector.extract_strided_slice %109 {offsets = [0, 256], sizes = [8, 128], strides = [1, 1]} : vector<8x384xf32> to vector<8x128xf32>
    %113 = vector.extract_strided_slice %103 {offsets = [0, 384], sizes = [8, 128], strides = [1, 1]} : vector<8x512xf32> to vector<8x128xf32>
    %114 = math.tanh %113 : vector<8x128xf32>
    %115 = arith.mulf %111, %97 : vector<8x128xf32>
    %116 = arith.mulf %110, %114 : vector<8x128xf32>
    %117 = arith.addf %115, %116 : vector<8x128xf32>
    %118 = math.tanh %117 : vector<8x128xf32>
    %119 = arith.mulf %112, %118 : vector<8x128xf32>
    %c40 = arith.constant 40 : index
    %c0_31 = arith.constant 0 : index
    %120 = vector.load %arg3[%c40, %c0_31] : memref<64x512xf32, #tpu.memory_space<vmem>>, vector<8x512xf32>
    %121 = vector.extract_strided_slice %119 {offsets = [0, 0], sizes = [8, 64], strides = [1, 1]} : vector<8x128xf32> to vector<8x64xf32>
    %cst_32 = arith.constant dense<0.000000e+00> : vector<8x512xf32>
    %122 = tpu.matmul %121, %17, %cst_32 {dimension_numbers = #tpu.dot_dimension_numbers<[1], [0], [0], [1], [0, 0, 1, 1], [], []>} : vector<8x64xf32>, vector<64x512xf32>, vector<8x512xf32> -> vector<8x512xf32>
    %123 = arith.addf %120, %122 : vector<8x512xf32>
    %124 = vector.extract_strided_slice %123 {offsets = [0, 0], sizes = [8, 384], strides = [1, 1]} : vector<8x512xf32> to vector<8x384xf32>
    %125 = arith.negf %124 : vector<8x384xf32>
    %126 = math.exp %125 : vector<8x384xf32>
    %cst_33 = arith.constant 1.000000e+00 : f32
    %127 = vector.broadcast %cst_33 : f32 to vector<8x384xf32>
    %128 = arith.addf %127, %126 : vector<8x384xf32>
    %129 = arith.divf %127, %128 : vector<8x384xf32>
    %130 = vector.extract_strided_slice %129 {offsets = [0, 0], sizes = [8, 128], strides = [1, 1]} : vector<8x384xf32> to vector<8x128xf32>
    %131 = vector.extract_strided_slice %129 {offsets = [0, 128], sizes = [8, 128], strides = [1, 1]} : vector<8x384xf32> to vector<8x128xf32>
    %132 = vector.extract_strided_slice %129 {offsets = [0, 256], sizes = [8, 128], strides = [1, 1]} : vector<8x384xf32> to vector<8x128xf32>
    %133 = vector.extract_strided_slice %123 {offsets = [0, 384], sizes = [8, 128], strides = [1, 1]} : vector<8x512xf32> to vector<8x128xf32>
    %134 = math.tanh %133 : vector<8x128xf32>
    %135 = arith.mulf %131, %117 : vector<8x128xf32>
    %136 = arith.mulf %130, %134 : vector<8x128xf32>
    %137 = arith.addf %135, %136 : vector<8x128xf32>
    %138 = math.tanh %137 : vector<8x128xf32>
    %139 = arith.mulf %132, %138 : vector<8x128xf32>
    %c48 = arith.constant 48 : index
    %c0_34 = arith.constant 0 : index
    %140 = vector.load %arg3[%c48, %c0_34] : memref<64x512xf32, #tpu.memory_space<vmem>>, vector<8x512xf32>
    %141 = vector.extract_strided_slice %139 {offsets = [0, 0], sizes = [8, 64], strides = [1, 1]} : vector<8x128xf32> to vector<8x64xf32>
    %cst_35 = arith.constant dense<0.000000e+00> : vector<8x512xf32>
    %142 = tpu.matmul %141, %17, %cst_35 {dimension_numbers = #tpu.dot_dimension_numbers<[1], [0], [0], [1], [0, 0, 1, 1], [], []>} : vector<8x64xf32>, vector<64x512xf32>, vector<8x512xf32> -> vector<8x512xf32>
    %143 = arith.addf %140, %142 : vector<8x512xf32>
    %144 = vector.extract_strided_slice %143 {offsets = [0, 0], sizes = [8, 384], strides = [1, 1]} : vector<8x512xf32> to vector<8x384xf32>
    %145 = arith.negf %144 : vector<8x384xf32>
    %146 = math.exp %145 : vector<8x384xf32>
    %cst_36 = arith.constant 1.000000e+00 : f32
    %147 = vector.broadcast %cst_36 : f32 to vector<8x384xf32>
    %148 = arith.addf %147, %146 : vector<8x384xf32>
    %149 = arith.divf %147, %148 : vector<8x384xf32>
    %150 = vector.extract_strided_slice %149 {offsets = [0, 0], sizes = [8, 128], strides = [1, 1]} : vector<8x384xf32> to vector<8x128xf32>
    %151 = vector.extract_strided_slice %149 {offsets = [0, 128], sizes = [8, 128], strides = [1, 1]} : vector<8x384xf32> to vector<8x128xf32>
    %152 = vector.extract_strided_slice %149 {offsets = [0, 256], sizes = [8, 128], strides = [1, 1]} : vector<8x384xf32> to vector<8x128xf32>
    %153 = vector.extract_strided_slice %143 {offsets = [0, 384], sizes = [8, 128], strides = [1, 1]} : vector<8x512xf32> to vector<8x128xf32>
    %154 = math.tanh %153 : vector<8x128xf32>
    %155 = arith.mulf %151, %137 : vector<8x128xf32>
    %156 = arith.mulf %150, %154 : vector<8x128xf32>
    %157 = arith.addf %155, %156 : vector<8x128xf32>
    %158 = math.tanh %157 : vector<8x128xf32>
    %159 = arith.mulf %152, %158 : vector<8x128xf32>
    %c56 = arith.constant 56 : index
    %c0_37 = arith.constant 0 : index
    %160 = vector.load %arg3[%c56, %c0_37] : memref<64x512xf32, #tpu.memory_space<vmem>>, vector<8x512xf32>
    %161 = vector.extract_strided_slice %159 {offsets = [0, 0], sizes = [8, 64], strides = [1, 1]} : vector<8x128xf32> to vector<8x64xf32>
    %cst_38 = arith.constant dense<0.000000e+00> : vector<8x512xf32>
    %162 = tpu.matmul %161, %17, %cst_38 {dimension_numbers = #tpu.dot_dimension_numbers<[1], [0], [0], [1], [0, 0, 1, 1], [], []>} : vector<8x64xf32>, vector<64x512xf32>, vector<8x512xf32> -> vector<8x512xf32>
    %163 = arith.addf %160, %162 : vector<8x512xf32>
    %164 = vector.extract_strided_slice %163 {offsets = [0, 0], sizes = [8, 384], strides = [1, 1]} : vector<8x512xf32> to vector<8x384xf32>
    %165 = arith.negf %164 : vector<8x384xf32>
    %166 = math.exp %165 : vector<8x384xf32>
    %cst_39 = arith.constant 1.000000e+00 : f32
    %167 = vector.broadcast %cst_39 : f32 to vector<8x384xf32>
    %168 = arith.addf %167, %166 : vector<8x384xf32>
    %169 = arith.divf %167, %168 : vector<8x384xf32>
    %170 = vector.extract_strided_slice %169 {offsets = [0, 0], sizes = [8, 128], strides = [1, 1]} : vector<8x384xf32> to vector<8x128xf32>
    %171 = vector.extract_strided_slice %169 {offsets = [0, 128], sizes = [8, 128], strides = [1, 1]} : vector<8x384xf32> to vector<8x128xf32>
    %172 = vector.extract_strided_slice %169 {offsets = [0, 256], sizes = [8, 128], strides = [1, 1]} : vector<8x384xf32> to vector<8x128xf32>
    %173 = vector.extract_strided_slice %163 {offsets = [0, 384], sizes = [8, 128], strides = [1, 1]} : vector<8x512xf32> to vector<8x128xf32>
    %174 = math.tanh %173 : vector<8x128xf32>
    %175 = arith.mulf %171, %157 : vector<8x128xf32>
    %176 = arith.mulf %170, %174 : vector<8x128xf32>
    %177 = arith.addf %175, %176 : vector<8x128xf32>
    %178 = math.tanh %177 : vector<8x128xf32>
    %179 = arith.mulf %172, %178 : vector<8x128xf32>
    %c128 = arith.constant 128 : index
    %c0_40 = arith.constant 0 : index
    %180 = vector.load %arg1[%c128, %c0_40] : memref<192x512xf32, #tpu.memory_space<vmem>>, vector<64x32xf32>
    %c120 = arith.constant 120 : index
    %c0_41 = arith.constant 0 : index
    %181 = vector.load %arg1[%c120, %c0_41] : memref<192x512xf32, #tpu.memory_space<vmem>>, vector<1x32xf32>
    %182 = vector.extract_strided_slice %179 {offsets = [0, 0], sizes = [8, 64], strides = [1, 1]} : vector<8x128xf32> to vector<8x64xf32>
    %cst_42 = arith.constant dense<0.000000e+00> : vector<8x32xf32>
    %183 = tpu.matmul %182, %180, %cst_42 {dimension_numbers = #tpu.dot_dimension_numbers<[1], [0], [0], [1], [0, 0, 1, 1], [], []>} : vector<8x64xf32>, vector<64x32xf32>, vector<8x32xf32> -> vector<8x32xf32>
    %184 = vector.broadcast %181 : vector<1x32xf32> to vector<8x32xf32>
    %185 = arith.addf %183, %184 : vector<8x32xf32>
    %cst_43 = arith.constant 0.000000e+00 : f32
    %186 = vector.broadcast %cst_43 : f32 to vector<8x32xf32>
    %187 = arith.cmpf oge, %185, %186 : vector<8x32xf32>
    %cst_44 = arith.constant 1.000000e-01 : f32
    %188 = vector.broadcast %cst_44 : f32 to vector<8x32xf32>
    %189 = arith.mulf %188, %185 : vector<8x32xf32>
    %190 = arith.select %187, %185, %189 : vector<8x32xi1>, vector<8x32xf32>
    %c0_45 = arith.constant 0 : index
    %c0_46 = arith.constant 0 : index
    %191 = vector.load %arg2[%c0_45, %c0_46] : memref<8x32xf32, #tpu.memory_space<vmem>>, vector<8x32xf32>
    tpu.vector_store %arg2[%c0_45, %c0_46], %190 {strides = array<i32>} : memref<8x32xf32, #tpu.memory_space<vmem>>, vector<8x32xf32>,
    return
  }
}

</mosaic_0001>

<bundles_post_ra>
// kernel: encoder_forward.1
= control target key start
LH: loop header
LB: loop body
LE: loop exit
PB: predicated region body
PF: predicated region fallthrough
CT: control target
= control target key end

     0   :  { %7 = vsyncpa [#allocation4], 0  ;;  %s2676_s9 = smov [#allocation3]   ;;  %s3023_s0 = inlined_call_operand.vmem [shape: f32[64,2], index: 0, kind: input, shape index: {}]   ;;  %s3024_s1 = inlined_call_operand.hbm [shape: f32[192,512], index: 1, kind: input, shape index: {}]   ;;  %s3025_s2 = inlined_call_operand.vmem [shape: f32[8,32], index: 2, kind: output, shape index: {}]  }
   0x1   :  { %s15_s10 = sshll.u32 %s2676_s9, 4  ;;  %s2652_s13 = scalar_lea.hbm %s3024_s1, 12288  ;;  %s16_s10 = int_to_ptr.vmem [resolvable:$true] %s15_s10 }
   0x2   :  { %p2653_p0 = scmp.ne.s32.totalorder %s3024_s1, %s2652_s13  ;;  %p2656_p1 = scmp.lt.u32.totalorder %s2652_s13, %s3024_s1 }
   0x4   :  { %p2658_p2 = pnand %p2656_p1, %p2653_p0 }
   0x6   :  { %2661 = shalt.err (!%p2658_p2)
}
   0x7   :  { %s2662_s18 = scalar_lea.vmem %s16_s10, 12288  ;;  %p2667_p4 = scmp.lt.s32.totalorder %s16_s10, %s16_s10 }
   0x8   :  { %p2663_p3 = scmp.ne.s32.totalorder %s16_s10, %s2662_s18  ;;  %p2668_p5 = scmp.lt.s32.totalorder %s2662_s18, %s2662_s18 }
   0xa   :  { %p2669_p6 = por %p2668_p5, %p2667_p4 }
   0xc   :  { %p2670_p7 = pnand %p2669_p6, %p2663_p3 }
   0xe   :  { %2673 = shalt.err (!%p2670_p7)
}
   0xf   :  { %s2677_s19 = smov 512   ;;  %s2678_s20 = smov 32  }
  0x10   :  { %21 = dma.hbm_to_vmem [thread:$0]  %s3024_s1, 12288, %s16_s10, [#allocation4], %s2677_s19, %s2677_s19, %s2678_s20  }
  0x11   :  { %2674 = dma.done.wait [#allocation4], 12288  }
  0x12   :  { %2675 = vsyncadd [#allocation4], 4294955008  ;;  %vm78_vm0 = vcmask 1041408   ;;  %vm53_vm1 = vcmask 15360   ;;  %v25_v0 = vld [vmem:[#allocation3 + $0x1a0] sm:$0x3] }
  0x13   :  { %v45_v1 = vld [vmem:[%s3023_s0] sm:$0xff]  ;;  %v46_v2 = vld [vmem:[%s3023_s0 + $0x8] sm:$0xff]  ;;  %2137 = vmatprep.subr.msk.mxu0 %vm78_vm0, %v25_v0  ;;  %v47_v3 = vld [vmem:[%s3023_s0 + $0x10] sm:$0xff]  ;;  %v2679_v33 = vmov 0.0   ;;  %vm232_vm3 = vcmask 261120   ;;  %vm551_vm11 = vcmask 523264  }
  0x14   :  { %2139 = vmatprep.mubr.msk.f32.mxu0 %vm53_vm1, %v45_v1  ;;  %2138 = vmatpush3.msk.msra.mxu0 %vm78_vm0, %v25_v0  ;;  %v48_v4 = vld [vmem:[%s3023_s0 + $0x18] sm:$0xff]  ;;  %v28_v5 = vld [vmem:[#allocation3 + $0x8] sm:$0xff]  ;;  %v27_v7 = vld [vmem:[#allocation3] sm:$0xff]  ;;  %vm2681_vm12 = vmmov 0  }
  0x15   :  { %2140 = vmatmul.mubr.msk.f32.vlgmr.msra.gmra.mrb[0].mxu0 %vm53_vm1, %v46_v2  ;;  %v32_v6 = vld [vmem:[#allocation3 + $0x28] sm:$0xff]  ;;  %v31_v9 = vld [vmem:[#allocation3 + $0x20] sm:$0xff]  ;;  %v30_v10 = vld [vmem:[#allocation3 + $0x18] sm:$0xff]  ;;  %321 = vmatprep.mubr.f32.mxu1 %v2679_v33 }
  0x16   :  { %2142 = vmatprep.mubr.msk.f32.mxu0 %vm53_vm1, %v47_v3  ;;  %v2170_v8 = vpack.c.bf16 %v32_v6, %v28_v5  ;;  %v34_v11 = vld [vmem:[#allocation3 + $0x38] sm:$0xff]  ;;  %v49_v12 = vld [vmem:[%s3023_s0 + $0x20] sm:$0xff]  ;;  %v2172_v13 = vpack.c.bf16 %v31_v9, %v27_v7  ;;  %v50_v15 = vld [vmem:[%s3023_s0 + $0x28] sm:$0xff] }
  0x17   :  { %v2178_v14 = vpack.c.bf16 %v34_v11, %v30_v10  ;;  %v51_v16 = vld [vmem:[%s3023_s0 + $0x30] sm:$0xff]  ;;  %v52_v17 = vld [vmem:[%s3023_s0 + $0x38] sm:$0xff]  ;;  %v36_v21 = vld [vmem:[#allocation3 + $0x48] sm:$0xff] }
  0x18   :  { %2171 = vmatprep.subr.bf16.mxu1 %v2170_v8  ;;  %v29_v18 = vld [vmem:[#allocation3 + $0x10] sm:$0xff]  ;;  %v40_v22 = vld [vmem:[#allocation3 + $0x68] sm:$0xff]  ;;  %v35_v24 = vld [vmem:[#allocation3 + $0x40] sm:$0xff] }
  0x19   :  { %2143 = vmatmul.mubr.msk.f32.gmra.mrb[2].mxu0 %vm53_vm1, %v48_v4  ;;  %2173 = vmatpush1.bf16.msra.mxu1 %v2172_v13  ;;  %v33_v19 = vld [vmem:[#allocation3 + $0x30] sm:$0xff]  ;;  %v2174_v23 = vpack.c.bf16 %v40_v22, %v36_v21  ;;  %v39_v25 = vld [vmem:[#allocation3 + $0x60] sm:$0xff]  ;;  %v38_v26 = vld [vmem:[#allocation3 + $0x58] sm:$0xff] }
  0x1a   :  { %2145 = vmatprep.mubr.msk.f32.mxu0 %vm53_vm1, %v49_v12  ;;  %2179 = vmatprep.subr.bf16.mxu0 %v2178_v14  ;;  %v2180_v20 = vpack.c.bf16 %v33_v19, %v29_v18  ;;  %v2176_v27 = vpack.c.bf16 %v39_v25, %v35_v24  ;;  %v42_v28 = vld [vmem:[#allocation3 + $0x78] sm:$0xff]  ;;  %v37_v29 = vld [vmem:[#allocation3 + $0x50] sm:$0xff]  ;;  %v516_v34 = vld [vmem:[#allocation3 + $0x88] sm:$0xff] }
  0x1b   :  { %v41_v30 = vld [vmem:[#allocation3 + $0x70] sm:$0xff]  ;;  %2175 = vmatprep.subr.bf16.mxu1 %v2174_v23  ;;  %v2182_v31 = vpack.c.bf16 %v42_v28, %v38_v26  ;;  %v520_v35 = vld [vmem:[#allocation3 + $0xa8] sm:$0xff]  ;;  %v518_v37 = vld [vmem:[#allocation3 + $0x98] sm:$0xff] }
  0x1c   :  { %2181 = vmatpush1.bf16.msra.mxu0 %v2180_v20  ;;  %v2184_v32 = vpack.c.bf16 %v41_v30, %v37_v29  ;;  %v2743_v36 = vpack.c.bf16 %v520_v35, %v516_v34  ;;  %v522_v38 = vld [vmem:[#allocation3 + $0xb8] sm:$0xff]  ;;  %v2749_v40 = vld [vmem:[#allocation3 + $0x1c0] ss:$0 sm:$0xff]  ;;  %v524_v47 = vld [vmem:[#allocation3 + $0xc8] sm:$0xff] }
  0x1d   :  { %2146 = vmatmul.mubr.msk.f32.gmra.mrb[4].mxu0 %vm53_vm1, %v50_v15  ;;  %2177 = vmatpush1.bf16.msra.mxu1 %v2176_v27  ;;  %v2746_v39 = vpack.c.bf16 %v522_v38, %v518_v37  ;;  %v515_v43 = vld [vmem:[#allocation3 + $0x80] sm:$0xff]  ;;  %v528_v48 = vld [vmem:[#allocation3 + $0xe8] sm:$0xff]  ;;  %v517_v49 = vld [vmem:[#allocation3 + $0x90] sm:$0xff] }
  0x1e   :  { %2148 = vmatprep.mubr.msk.f32.mxu0 %vm53_vm1, %v51_v16  ;;  %2183 = vmatprep.subr.bf16.mxu0 %v2182_v31  ;;  %v519_v44 = vld [vmem:[#allocation3 + $0xa0] sm:$0xff]  ;;  %v521_v50 = vld [vmem:[#allocation3 + $0xb0] sm:$0xff]  ;;  %v2755_v55 = vpack.c.bf16 %v528_v48, %v524_v47  ;;  %v532_v58 = vld [vmem:[#allocation3 + $0x108] sm:$0xff] }
  0x1f   :  { %2187 = vmatprep.subr.bf16.mxu1 %v2743_v36  ;;  %v2753_v53 = vpack.c.bf16 %v519_v44, %v515_v43  ;;  %v523_v56 = vld [vmem:[#allocation3 + $0xc0] sm:$0xff]  ;;  %v536_v62 = vld [vmem:[#allocation3 + $0x128] sm:$0xff]  ;;  %v2758_v63 = vpack.c.bf16 %v521_v50, %v517_v49  ;;  %v526_v0 = vld [vmem:[#allocation3 + $0xd8] sm:$0xff] }
  0x20   :  { %2185 = vmatpush1.bf16.msra.mxu0 %v2184_v32  ;;  %v527_v57 = vld [vmem:[#allocation3 + $0xe0] sm:$0xff]  ;;  %v530_v1 = vld [vmem:[#allocation3 + $0xf8] sm:$0xff]  ;;  %v525_v2 = vld [vmem:[#allocation3 + $0xd0] sm:$0xff]  ;;  %v2768_v7 = vpack.c.bf16 %v536_v62, %v532_v58 }
  0x21   :  { %2149 = vmatmul.mubr.msk.f32.gmra.mrb[6].mxu0 %vm53_vm1, %v52_v17  ;;  %2203 = vmatprep.subr.bf16.mxu0 %v2746_v39  ;;  %v529_v3 = vld [vmem:[#allocation3 + $0xf0] sm:$0xff]  ;;  %v2766_v6 = vpack.c.bf16 %v527_v57, %v523_v56  ;;  %v531_v8 = vld [vmem:[#allocation3 + $0x100] sm:$0xff]  ;;  %v2770_v10 = vpack.c.bf16 %v530_v1, %v526_v0  ;;  %v540_v11 = vld [vmem:[#allocation3 + $0x148] sm:$0xff]  ;;  %v212_v56 = vlaneseq }
  0x22   :  { %434 = vmatprep.mubr.f32.mxu0 %v2679_v33  ;;  %v535_v9 = vld [vmem:[#allocation3 + $0x120] sm:$0xff]  ;;  %v2775_v15 = vpack.c.bf16 %v529_v3, %v525_v2  ;;  %v544_v16 = vld [vmem:[#allocation3 + $0x168] sm:$0xff]  ;;  %v534_v17 = vld [vmem:[#allocation3 + $0x118] sm:$0xff] }
  0x23   :  { %v538_v18 = vld [vmem:[#allocation3 + $0x138] sm:$0xff]  ;;  %v533_v19 = vld [vmem:[#allocation3 + $0x110] sm:$0xff]  ;;  %v2782_v23 = vpack.c.bf16 %v535_v9, %v531_v8  ;;  %v2785_v24 = vpack.c.bf16 %v544_v16, %v540_v11  ;;  %v539_v25 = vld [vmem:[#allocation3 + $0x140] sm:$0xff]  ;;  %v213_v57 = vshrl.u32 %v212_v56, 7 }
  0x24   :  { %v537_v20 = vld [vmem:[#allocation3 + $0x130] sm:$0xff]  ;;  %v2787_v26 = vpack.c.bf16 %v538_v18, %v534_v17  ;;  %v543_v30 = vld [vmem:[#allocation3 + $0x160] sm:$0xff]  ;;  %v542_v32 = vld [vmem:[#allocation3 + $0x158] sm:$0xff] }
  0x25   :  { %v2793_v31 = vpack.c.bf16 %v537_v20, %v533_v19  ;;  %v546_v34 = vld [vmem:[#allocation3 + $0x178] sm:$0xff]  ;;  %v541_v35 = vld [vmem:[#allocation3 + $0x150] sm:$0xff]  ;;  %v2800_v38 = vpack.c.bf16 %v543_v30, %v539_v25  ;;  %v214_v58 = vsub.s32 0, %v213_v57  ;;  %v222_v3 = vsub.s32 2, %v213_v57 }
  0x26   :  { %v545_v37 = vld [vmem:[#allocation3 + $0x170] sm:$0xff] }
  0xe8   :  { %v2141_v41 = vpop.f32.mrb[0].mxu0 }
  0xe9   :  { %v148_v42 = vpop.f32.mrb[1].mxu0  ;;  %v154_v45 = vadd.f32 %v2141_v41, %v2749_v40  ;;  %v2803_v41 = vpack.c.bf16 %v546_v34, %v542_v32 }
  0xea   :  { %v149_v46 = vadd.f32 %v148_v42, %v2749_v40 }
  0xeb   :  { %v196_v59 = vmul.f32 0.1, %v154_v45  ;;  %vm188_vm4 = vcmp.ge.f32.partialorder %v154_v45, 0.0 }
  0xec   :  { %vm187_vm2 = vcmp.ge.f32.partialorder %v149_v46, 0.0  ;;  %v195_v51 = vmul.f32 0.1, %v149_v46  ;;  %v2144_v52 = vpop.f32.mrb[2].mxu0 }
  0xed   :  { %v158_v54 = vpop.f32.mrb[3].mxu0  ;;  %v164_v12 = vadd.f32 %v2144_v52, %v2749_v40  ;;  %v204_v14 = vsel %vm188_vm4, %v154_v45, %v196_v59  ;;  %v2808_v45 = vpack.c.bf16 %v545_v37, %v541_v35  ;;  %v44_v59 = vld [vmem:[#allocation3 + $0x180] ss:$8 sm:$0xf] }
  0xee   :  { %v159_v60 = vadd.f32 %v158_v54, %v2749_v40  ;;  %v203_v61 = vsel %vm187_vm2, %v149_v46, %v195_v51 }
  0xef   :  { %2064 = vmatmul.mubr.msk.f32.vlgmr.msra.gmra.mrb[0].mxu1 %vm232_vm3, %v203_v61  ;;  %2072 = vmatmul.mubr.msk.f32.vlgmr.msra.gmra.mrb[8].mxu0 %vm232_vm3, %v203_v61  ;;  %v198_v27 = vmul.f32 0.1, %v164_v12  ;;  %vm190_vm6 = vcmp.ge.f32.partialorder %v164_v12, 0.0  ;;  %v2857_v61 = vrot.slane %v44_v59, %v214_v58 }
  0xf0   :  { %2189 = vmatpush1.bf16.msra.mxu1 %v2753_v53  ;;  %327 = vmatprep.mubr.f32.mxu1 %v2679_v33  ;;  %v2147_v4 = vpop.f32.mrb[4].mxu0  ;;  %v197_v13 = vmul.f32 0.1, %v159_v60  ;;  %vm189_vm5 = vcmp.ge.f32.partialorder %v159_v60, 0.0 }
  0xf1   :  { %440 = vmatprep.mubr.f32.mxu0 %v2679_v33  ;;  %v168_v5 = vpop.f32.mrb[5].mxu0  ;;  %2191 = vmatprep.subr.bf16.mxu1 %v2755_v55  ;;  %v174_v42 = vadd.f32 %v2147_v4, %v2749_v40  ;;  %v206_v44 = vsel %vm190_vm6, %v164_v12, %v198_v27  ;;  %v226_v12 = vsub.s32 3, %v213_v57 }
  0xf2   :  { %2205 = vmatpush1.bf16.msra.mxu0 %v2758_v63  ;;  %v169_v28 = vadd.f32 %v168_v5, %v2749_v40  ;;  %v205_v29 = vsel %vm189_vm5, %v159_v60, %v197_v13  ;;  %v218_v60 = vsub.s32 1, %v213_v57  ;;  %v2863_v13 = vrot.slane %v44_v59, %v222_v3 }
  0xf3   :  { %2065 = vmatmul.mubr.msk.f32.gmra.mrb[2].mxu1 %vm232_vm3, %v204_v14  ;;  %2073 = vmatmul.mubr.msk.f32.gmra.mrb[10].mxu0 %vm232_vm3, %v204_v14  ;;  %v200_v46 = vmul.f32 0.1, %v174_v42  ;;  %vm192_vm8 = vcmp.ge.f32.partialorder %v174_v42, 0.0  ;;  %v2865_v14 = vrot.slane %v44_v59, %v226_v12 }
  0xf4   :  { %333 = vmatprep.mubr.f32.mxu1 %v2679_v33  ;;  %446 = vmatprep.mubr.f32.mxu0 %v2679_v33  ;;  %v2150_v21 = vpop.f32.mrb[6].mxu0  ;;  %v199_v43 = vmul.f32 0.1, %v169_v28  ;;  %vm191_vm7 = vcmp.ge.f32.partialorder %v169_v28, 0.0  ;;  %v2859_v62 = vrot.slane %v44_v59, %v218_v60 }
  0xf5   :  { %2193 = vmatpush1.bf16.msra.mxu1 %v2766_v6  ;;  %v178_v22 = vpop.f32.mrb[7].mxu0  ;;  %2207 = vmatprep.subr.bf16.mxu0 %v2770_v10  ;;  %v184_v49 = vadd.f32 %v2150_v21, %v2749_v40  ;;  %v208_v51 = vsel %vm192_vm8, %v174_v42, %v200_v46 }
  0xf6   :  { %2195 = vmatprep.subr.bf16.mxu1 %v2768_v7  ;;  %2209 = vmatpush1.bf16.msra.mxu0 %v2775_v15  ;;  %v179_v47 = vadd.f32 %v178_v22, %v2749_v40  ;;  %v207_v48 = vsel %vm191_vm7, %v169_v28, %v199_v43 }
  0xf7   :  { %2066 = vmatmul.mubr.msk.f32.gmra.mrb[4].mxu1 %vm232_vm3, %v205_v29  ;;  %2074 = vmatmul.mubr.msk.f32.gmra.mrb[12].mxu0 %vm232_vm3, %v205_v29  ;;  %v202_v52 = vmul.f32 0.1, %v184_v49  ;;  %vm194_vm10 = vcmp.ge.f32.partialorder %v184_v49, 0.0 }
  0xf8   :  { %339 = vmatprep.mubr.f32.mxu1 %v2679_v33  ;;  %452 = vmatprep.mubr.f32.mxu0 %v2679_v33  ;;  %v201_v50 = vmul.f32 0.1, %v179_v47  ;;  %vm193_vm9 = vcmp.ge.f32.partialorder %v179_v47, 0.0 }
  0xf9   :  { %2197 = vmatpush1.bf16.msra.mxu1 %v2782_v23  ;;  %2211 = vmatprep.subr.bf16.mxu0 %v2787_v26  ;;  %v210_v40 = vsel %vm194_vm10, %v184_v49, %v202_v52 }
  0xfa   :  { %2199 = vmatprep.subr.bf16.mxu1 %v2785_v24  ;;  %2213 = vmatpush1.bf16.msra.mxu0 %v2793_v31  ;;  %v209_v54 = vsel %vm193_vm9, %v179_v47, %v201_v50 }
  0xfb   :  { %2067 = vmatmul.mubr.msk.f32.gmra.mrb[6].mxu1 %vm232_vm3, %v206_v44  ;;  %2075 = vmatmul.mubr.msk.f32.gmra.mrb[14].mxu0 %vm232_vm3, %v206_v44 }
  0xfc   :  { %345 = vmatprep.mubr.f32.mxu1 %v2679_v33  ;;  %458 = vmatprep.mubr.f32.mxu0 %v2679_v33 }
  0xfd   :  { %2201 = vmatpush1.bf16.msra.mxu1 %v2800_v38  ;;  %2215 = vmatprep.subr.bf16.mxu0 %v2803_v41 }
  0xfe   :  { %2217 = vmatpush1.bf16.msra.mxu0 %v2808_v45  ;;  %2219 = vmatprep.subr.bf16.mxu1 %v2743_v36 }
  0xff   :  { %2068 = vmatmul.mubr.msk.f32.gmra.mrb[8].mxu1 %vm232_vm3, %v207_v48  ;;  %2076 = vmatmul.mubr.msk.f32.gmra.mrb[16].mxu0 %vm232_vm3, %v207_v48 }
 0x100   :  { %351 = vmatprep.mubr.f32.mxu1 %v2679_v33  ;;  %464 = vmatprep.mubr.f32.mxu0 %v2679_v33 }
 0x101   :  { %2235 = vmatprep.subr.bf16.mxu0 %v2746_v39 }
 0x103   :  { %2069 = vmatmul.mubr.msk.f32.gmra.mrb[10].mxu1 %vm232_vm3, %v208_v51  ;;  %2077 = vmatmul.mubr.msk.f32.gmra.mrb[18].mxu0 %vm232_vm3, %v208_v51 }
 0x104   :  { %357 = vmatprep.mubr.f32.mxu1 %v2679_v33  ;;  %470 = vmatprep.mubr.f32.mxu0 %v2679_v33 }
 0x107   :  { %2070 = vmatmul.mubr.msk.f32.gmra.mrb[12].mxu1 %vm232_vm3, %v209_v54  ;;  %2078 = vmatmul.mubr.msk.f32.gmra.mrb[20].mxu0 %vm232_vm3, %v209_v54 }
 0x108   :  { %363 = vmatprep.mubr.f32.mxu1 %v2679_v33  ;;  %476 = vmatprep.mubr.f32.mxu0 %v2679_v33 }
 0x10b   :  { %2071 = vmatmul.mubr.msk.f32.gmra.mrb[14].mxu1 %vm232_vm3, %v210_v40  ;;  %2079 = vmatmul.mubr.msk.f32.gmra.mrb[22].mxu0 %vm232_vm3, %v210_v40 }
 0x10c   :  { %619 = vmatprep.mubr.f32.mxu1 %v2679_v33  ;;  %690 = vmatprep.mubr.f32.mxu0 %v2679_v33 }
 0x10f   :  { %620 = vmatmul.mubr.f32.vlgmr.msra.gmra.mrb[0].mxu1 %v2679_v33  ;;  %691 = vmatmul.mubr.f32.vlgmr.msra.gmra.mrb[8].mxu0 %v2679_v33 }
 0x110   :  { %2221 = vmatpush1.bf16.msra.mxu1 %v2753_v53  ;;  %2237 = vmatpush1.bf16.msra.mxu0 %v2758_v63 }
 0x111   :  { %2223 = vmatprep.subr.bf16.mxu1 %v2755_v55  ;;  %2239 = vmatprep.subr.bf16.mxu0 %v2770_v10 }
 0x112   :  { %796 = vmatprep.mubr.f32.mxu1 %v2679_v33  ;;  %867 = vmatprep.mubr.f32.mxu0 %v2679_v33 }
 0x114   :  { %2225 = vmatpush1.bf16.msra.mxu1 %v2766_v6  ;;  %2241 = vmatpush1.bf16.msra.mxu0 %v2775_v15 }
 0x115   :  { %2227 = vmatprep.subr.bf16.mxu1 %v2768_v7  ;;  %2243 = vmatprep.subr.bf16.mxu0 %v2787_v26 }
 0x118   :  { %2229 = vmatpush1.bf16.msra.mxu1 %v2782_v23  ;;  %2245 = vmatpush1.bf16.msra.mxu0 %v2793_v31 }
 0x119   :  { %2231 = vmatprep.subr.bf16.mxu1 %v2785_v24  ;;  %2247 = vmatprep.subr.bf16.mxu0 %v2803_v41 }
 0x11c   :  { %2233 = vmatpush1.bf16.msra.mxu1 %v2800_v38  ;;  %2249 = vmatpush1.bf16.msra.mxu0 %v2808_v45 }
 0x11d   :  { %2251 = vmatprep.subr.bf16.mxu1 %v2743_v36  ;;  %2267 = vmatprep.subr.bf16.mxu0 %v2746_v39 }
 0x1e2   :  { %v621_v0 = vpop.f32.mrb[0].mxu1  ;;  %v692_v1 = vpop.f32.mrb[8].mxu0 }
 0x1e3   :  { %v2454_v2 = vadd.f32 %v621_v0, %v2857_v61  ;;  %v623_v4 = vpop.f32.mrb[1].mxu1  ;;  %v694_v5 = vpop.f32.mrb[9].mxu0  ;;  %v2470_v16 = vadd.f32 %v692_v1, %v2863_v13 }
 0x1e4   :  { %v2455_v8 = vadd.f32 %v623_v4, %v2859_v62  ;;  %v2471_v17 = vadd.f32 %v694_v5, %v2865_v14 }
 0x1e5   :  { %v2080_v9 = vmul.f32 -1.442695, %v2454_v2  ;;  %v2082_v18 = vmul.f32 -1.442695, %v2470_v16 }
 0x1e6   :  { %v2081_v11 = vmul.f32 -1.442695, %v2455_v8 }
 0x1e7   :  { %2524 = vpow2.f32 %v2080_v9 }
 0x1e8   :  { %2526 = vpow2.f32 %v2081_v11 }
 0x1e9   :  { %2528 = vtanh.f32 %v2471_v17 }
 0x1ea   :  { %2530 = vpow2.f32 %v2082_v18 }
 0x1f1   :  { %v2525_v19 = vpop.eup %2524 }
 0x1f2   :  { %v710_v20 = vadd.f32 1.0, %v2525_v19  ;;  %v2527_v21 = vpop.eup %2526 }
 0x1f3   :  { %v711_v22 = vadd.f32 1.0, %v2527_v21  ;;  %v2529_v25 = vpop.eup %2528 }
 0x1f4   :  { %2532 = vrcp.f32 %v710_v20  ;;  %v2531_v27 = vpop.eup %2530 }
 0x1f5   :  { %2534 = vrcp.f32 %v711_v22  ;;  %v712_v32 = vadd.f32 1.0, %v2531_v27 }
 0x1f7   :  { %2536 = vrcp.f32 %v712_v32 }
 0x1fe   :  { %v2533_v28 = vpop.eup %2532 }
 0x1ff   :  { %v721_v29 = vmul.f32 %v2533_v28, %v2529_v25  ;;  %v2535_v30 = vpop.eup %2534 }
 0x200   :  { %v720_v34 = vmul.f32 0.0, %v2535_v30 }
 0x201   :  { %v2537_v37 = vpop.eup %2536 }
 0x202   :  { %v722_v35 = vadd.f32 %v721_v29, %v720_v34 }
 0x204   :  { %2538 = vtanh.f32 %v722_v35 }
 0x20e   :  { %v2539_v42 = vpop.eup %2538 }
 0x20f   :  { %v724_v43 = vmul.f32 %v2539_v42, %v2537_v37 }
 0x211   :  { %2083 = vmatmul.mubr.msk.f32.vlgmr.msra.gmra.mrb[2].mxu1 %vm551_vm11, %v724_v43  ;;  %2084 = vmatmul.mubr.msk.f32.vlgmr.msra.gmra.mrb[10].mxu0 %vm551_vm11, %v724_v43 }
 0x212   :  { %2253 = vmatpush1.bf16.msra.mxu1 %v2753_v53  ;;  %2269 = vmatpush1.bf16.msra.mxu0 %v2758_v63 }
 0x213   :  { %2255 = vmatprep.subr.bf16.mxu1 %v2755_v55  ;;  %2271 = vmatprep.subr.bf16.mxu0 %v2770_v10 }
 0x214   :  { %973 = vmatprep.mubr.f32.mxu1 %v2679_v33  ;;  %1044 = vmatprep.mubr.f32.mxu0 %v2679_v33 }
 0x216   :  { %2257 = vmatpush1.bf16.msra.mxu1 %v2766_v6  ;;  %2273 = vmatpush1.bf16.msra.mxu0 %v2775_v15 }
 0x217   :  { %2259 = vmatprep.subr.bf16.mxu1 %v2768_v7  ;;  %2275 = vmatprep.subr.bf16.mxu0 %v2787_v26 }
 0x21a   :  { %2261 = vmatpush1.bf16.msra.mxu1 %v2782_v23  ;;  %2277 = vmatpush1.bf16.msra.mxu0 %v2793_v31 }
 0x21b   :  { %2263 = vmatprep.subr.bf16.mxu1 %v2785_v24  ;;  %2279 = vmatprep.subr.bf16.mxu0 %v2803_v41 }
 0x21e   :  { %2265 = vmatpush1.bf16.msra.mxu1 %v2800_v38  ;;  %2281 = vmatpush1.bf16.msra.mxu0 %v2808_v45 }
 0x21f   :  { %2283 = vmatprep.subr.bf16.mxu1 %v2743_v36  ;;  %2299 = vmatprep.subr.bf16.mxu0 %v2746_v39 }
 0x2e4   :  { %v798_v44 = vpop.f32.mrb[2].mxu1  ;;  %v869_v46 = vpop.f32.mrb[10].mxu0 }
 0x2e5   :  { %v2456_v47 = vadd.f32 %v798_v44, %v2857_v61  ;;  %v800_v48 = vpop.f32.mrb[3].mxu1  ;;  %v871_v49 = vpop.f32.mrb[11].mxu0  ;;  %v2472_v54 = vadd.f32 %v869_v46, %v2863_v13 }
 0x2e6   :  { %v2457_v50 = vadd.f32 %v800_v48, %v2859_v62  ;;  %v2473_v40 = vadd.f32 %v871_v49, %v2865_v14 }
 0x2e7   :  { %v2085_v51 = vmul.f32 -1.442695, %v2456_v47  ;;  %v2087_v56 = vmul.f32 -1.442695, %v2472_v54 }
 0x2e8   :  { %v2086_v52 = vmul.f32 -1.442695, %v2457_v50 }
 0x2e9   :  { %2540 = vpow2.f32 %v2085_v51 }
 0x2ea   :  { %2542 = vpow2.f32 %v2086_v52 }
 0x2eb   :  { %2544 = vtanh.f32 %v2473_v40 }
 0x2ec   :  { %2546 = vpow2.f32 %v2087_v56 }
 0x2f3   :  { %v2541_v57 = vpop.eup %2540 }
 0x2f4   :  { %v887_v58 = vadd.f32 1.0, %v2541_v57  ;;  %v2543_v59 = vpop.eup %2542 }
 0x2f5   :  { %v888_v60 = vadd.f32 1.0, %v2543_v59  ;;  %v2545_v0 = vpop.eup %2544 }
 0x2f6   :  { %2548 = vrcp.f32 %v887_v58  ;;  %v2547_v1 = vpop.eup %2546 }
 0x2f7   :  { %2550 = vrcp.f32 %v888_v60  ;;  %v889_v5 = vadd.f32 1.0, %v2547_v1 }
 0x2f9   :  { %2552 = vrcp.f32 %v889_v5 }
 0x300   :  { %v2549_v2 = vpop.eup %2548 }
 0x301   :  { %v898_v3 = vmul.f32 %v2549_v2, %v2545_v0  ;;  %v2551_v4 = vpop.eup %2550 }
 0x302   :  { %v897_v8 = vmul.f32 %v2551_v4, %v722_v35 }
 0x303   :  { %v2553_v11 = vpop.eup %2552 }
 0x304   :  { %v899_v9 = vadd.f32 %v898_v3, %v897_v8 }
 0x306   :  { %2554 = vtanh.f32 %v899_v9 }
 0x310   :  { %v2555_v12 = vpop.eup %2554 }
 0x311   :  { %v901_v16 = vmul.f32 %v2555_v12, %v2553_v11 }
 0x313   :  { %2088 = vmatmul.mubr.msk.f32.vlgmr.msra.gmra.mrb[4].mxu1 %vm551_vm11, %v901_v16  ;;  %2089 = vmatmul.mubr.msk.f32.vlgmr.msra.gmra.mrb[12].mxu0 %vm551_vm11, %v901_v16 }
 0x314   :  { %2285 = vmatpush1.bf16.msra.mxu1 %v2753_v53  ;;  %2301 = vmatpush1.bf16.msra.mxu0 %v2758_v63 }
 0x315   :  { %2287 = vmatprep.subr.bf16.mxu1 %v2755_v55  ;;  %2303 = vmatprep.subr.bf16.mxu0 %v2770_v10 }
 0x316   :  { %1150 = vmatprep.mubr.f32.mxu1 %v2679_v33  ;;  %1221 = vmatprep.mubr.f32.mxu0 %v2679_v33 }
 0x318   :  { %2289 = vmatpush1.bf16.msra.mxu1 %v2766_v6  ;;  %2305 = vmatpush1.bf16.msra.mxu0 %v2775_v15 }
 0x319   :  { %2291 = vmatprep.subr.bf16.mxu1 %v2768_v7  ;;  %2307 = vmatprep.subr.bf16.mxu0 %v2787_v26 }
 0x31c   :  { %2293 = vmatpush1.bf16.msra.mxu1 %v2782_v23  ;;  %2309 = vmatpush1.bf16.msra.mxu0 %v2793_v31 }
 0x31d   :  { %2295 = vmatprep.subr.bf16.mxu1 %v2785_v24  ;;  %2311 = vmatprep.subr.bf16.mxu0 %v2803_v41 }
 0x320   :  { %2297 = vmatpush1.bf16.msra.mxu1 %v2800_v38  ;;  %2313 = vmatpush1.bf16.msra.mxu0 %v2808_v45 }
 0x321   :  { %2315 = vmatprep.subr.bf16.mxu1 %v2743_v36  ;;  %2331 = vmatprep.subr.bf16.mxu0 %v2746_v39 }
 0x3e6   :  { %v975_v17 = vpop.f32.mrb[4].mxu1  ;;  %v1046_v18 = vpop.f32.mrb[12].mxu0 }
 0x3e7   :  { %v2458_v19 = vadd.f32 %v975_v17, %v2857_v61  ;;  %v977_v20 = vpop.f32.mrb[5].mxu1  ;;  %v1048_v21 = vpop.f32.mrb[13].mxu0  ;;  %v2474_v28 = vadd.f32 %v1046_v18, %v2863_v13 }
 0x3e8   :  { %v2459_v22 = vadd.f32 %v977_v20, %v2859_v62  ;;  %v2475_v29 = vadd.f32 %v1048_v21, %v2865_v14 }
 0x3e9   :  { %v2090_v25 = vmul.f32 -1.442695, %v2458_v19  ;;  %v2092_v30 = vmul.f32 -1.442695, %v2474_v28 }
 0x3ea   :  { %v2091_v27 = vmul.f32 -1.442695, %v2459_v22 }
 0x3eb   :  { %2556 = vpow2.f32 %v2090_v25 }
 0x3ec   :  { %2558 = vpow2.f32 %v2091_v27 }
 0x3ed   :  { %2560 = vtanh.f32 %v2475_v29 }
 0x3ee   :  { %2562 = vpow2.f32 %v2092_v30 }
 0x3f5   :  { %v2557_v32 = vpop.eup %2556 }
 0x3f6   :  { %v1064_v34 = vadd.f32 1.0, %v2557_v32  ;;  %v2559_v35 = vpop.eup %2558 }
 0x3f7   :  { %v1065_v37 = vadd.f32 1.0, %v2559_v35  ;;  %v2561_v42 = vpop.eup %2560 }
 0x3f8   :  { %2564 = vrcp.f32 %v1064_v34  ;;  %v2563_v43 = vpop.eup %2562 }
 0x3f9   :  { %2566 = vrcp.f32 %v1065_v37  ;;  %v1066_v48 = vadd.f32 1.0, %v2563_v43 }
 0x3fb   :  { %2568 = vrcp.f32 %v1066_v48 }
 0x402   :  { %v2565_v44 = vpop.eup %2564 }
 0x403   :  { %v1075_v46 = vmul.f32 %v2565_v44, %v2561_v42  ;;  %v2567_v47 = vpop.eup %2566 }
 0x404   :  { %v1074_v49 = vmul.f32 %v2567_v47, %v899_v9 }
 0x405   :  { %v2569_v51 = vpop.eup %2568 }
 0x406   :  { %v1076_v50 = vadd.f32 %v1075_v46, %v1074_v49 }
 0x408   :  { %2570 = vtanh.f32 %v1076_v50 }
 0x412   :  { %v2571_v52 = vpop.eup %2570 }
 0x413   :  { %v1078_v54 = vmul.f32 %v2571_v52, %v2569_v51 }
 0x415   :  { %2093 = vmatmul.mubr.msk.f32.vlgmr.msra.gmra.mrb[6].mxu1 %vm551_vm11, %v1078_v54  ;;  %2094 = vmatmul.mubr.msk.f32.vlgmr.msra.gmra.mrb[14].mxu0 %vm551_vm11, %v1078_v54 }
 0x416   :  { %2317 = vmatpush1.bf16.msra.mxu1 %v2753_v53  ;;  %2333 = vmatpush1.bf16.msra.mxu0 %v2758_v63 }
 0x417   :  { %2319 = vmatprep.subr.bf16.mxu1 %v2755_v55  ;;  %2335 = vmatprep.subr.bf16.mxu0 %v2770_v10 }
 0x418   :  { %1327 = vmatprep.mubr.f32.mxu1 %v2679_v33  ;;  %1398 = vmatprep.mubr.f32.mxu0 %v2679_v33 }
 0x41a   :  { %2321 = vmatpush1.bf16.msra.mxu1 %v2766_v6  ;;  %2337 = vmatpush1.bf16.msra.mxu0 %v2775_v15 }
 0x41b   :  { %2323 = vmatprep.subr.bf16.mxu1 %v2768_v7  ;;  %2339 = vmatprep.subr.bf16.mxu0 %v2787_v26 }
 0x41e   :  { %2325 = vmatpush1.bf16.msra.mxu1 %v2782_v23  ;;  %2341 = vmatpush1.bf16.msra.mxu0 %v2793_v31 }
 0x41f   :  { %2327 = vmatprep.subr.bf16.mxu1 %v2785_v24  ;;  %2343 = vmatprep.subr.bf16.mxu0 %v2803_v41 }
 0x422   :  { %2329 = vmatpush1.bf16.msra.mxu1 %v2800_v38  ;;  %2345 = vmatpush1.bf16.msra.mxu0 %v2808_v45 }
 0x423   :  { %2347 = vmatprep.subr.bf16.mxu1 %v2743_v36  ;;  %2363 = vmatprep.subr.bf16.mxu0 %v2746_v39 }
 0x4e8   :  { %v1152_v40 = vpop.f32.mrb[6].mxu1  ;;  %v1223_v56 = vpop.f32.mrb[14].mxu0 }
 0x4e9   :  { %v2460_v57 = vadd.f32 %v1152_v40, %v2857_v61  ;;  %v1154_v58 = vpop.f32.mrb[7].mxu1  ;;  %v1225_v59 = vpop.f32.mrb[15].mxu0  ;;  %v2476_v2 = vadd.f32 %v1223_v56, %v2863_v13 }
 0x4ea   :  { %v2461_v60 = vadd.f32 %v1154_v58, %v2859_v62  ;;  %v2477_v3 = vadd.f32 %v1225_v59, %v2865_v14 }
 0x4eb   :  { %v2095_v0 = vmul.f32 -1.442695, %v2460_v57  ;;  %v2097_v4 = vmul.f32 -1.442695, %v2476_v2 }
 0x4ec   :  { %v2096_v1 = vmul.f32 -1.442695, %v2461_v60 }
 0x4ed   :  { %2572 = vpow2.f32 %v2095_v0 }
 0x4ee   :  { %2574 = vpow2.f32 %v2096_v1 }
 0x4ef   :  { %2576 = vtanh.f32 %v2477_v3 }
 0x4f0   :  { %2578 = vpow2.f32 %v2097_v4 }
 0x4f7   :  { %v2573_v5 = vpop.eup %2572 }
 0x4f8   :  { %v1241_v8 = vadd.f32 1.0, %v2573_v5  ;;  %v2575_v9 = vpop.eup %2574 }
 0x4f9   :  { %v1242_v11 = vadd.f32 1.0, %v2575_v9  ;;  %v2577_v12 = vpop.eup %2576 }
 0x4fa   :  { %2580 = vrcp.f32 %v1241_v8  ;;  %v2579_v16 = vpop.eup %2578 }
 0x4fb   :  { %2582 = vrcp.f32 %v1242_v11  ;;  %v1243_v20 = vadd.f32 1.0, %v2579_v16 }
 0x4fd   :  { %2584 = vrcp.f32 %v1243_v20 }
 0x504   :  { %v2581_v17 = vpop.eup %2580 }
 0x505   :  { %v1252_v18 = vmul.f32 %v2581_v17, %v2577_v12  ;;  %v2583_v19 = vpop.eup %2582 }
 0x506   :  { %v1251_v21 = vmul.f32 %v2583_v19, %v1076_v50 }
 0x507   :  { %v2585_v25 = vpop.eup %2584 }
 0x508   :  { %v1253_v22 = vadd.f32 %v1252_v18, %v1251_v21 }
 0x50a   :  { %2586 = vtanh.f32 %v1253_v22 }
 0x514   :  { %v2587_v27 = vpop.eup %2586 }
 0x515   :  { %v1255_v28 = vmul.f32 %v2587_v27, %v2585_v25 }
 0x517   :  { %2098 = vmatmul.mubr.msk.f32.vlgmr.msra.gmra.mrb[8].mxu1 %vm551_vm11, %v1255_v28  ;;  %2099 = vmatmul.mubr.msk.f32.vlgmr.msra.gmra.mrb[16].mxu0 %vm551_vm11, %v1255_v28 }
 0x518   :  { %2349 = vmatpush1.bf16.msra.mxu1 %v2753_v53  ;;  %2365 = vmatpush1.bf16.msra.mxu0 %v2758_v63 }
 0x519   :  { %2351 = vmatprep.subr.bf16.mxu1 %v2755_v55  ;;  %2367 = vmatprep.subr.bf16.mxu0 %v2770_v10 }
 0x51a   :  { %1504 = vmatprep.mubr.f32.mxu1 %v2679_v33  ;;  %1575 = vmatprep.mubr.f32.mxu0 %v2679_v33 }
 0x51c   :  { %2353 = vmatpush1.bf16.msra.mxu1 %v2766_v6  ;;  %2369 = vmatpush1.bf16.msra.mxu0 %v2775_v15 }
 0x51d   :  { %2355 = vmatprep.subr.bf16.mxu1 %v2768_v7  ;;  %2371 = vmatprep.subr.bf16.mxu0 %v2787_v26 }
 0x520   :  { %2357 = vmatpush1.bf16.msra.mxu1 %v2782_v23  ;;  %2373 = vmatpush1.bf16.msra.mxu0 %v2793_v31 }
 0x521   :  { %2359 = vmatprep.subr.bf16.mxu1 %v2785_v24  ;;  %2375 = vmatprep.subr.bf16.mxu0 %v2803_v41 }
 0x524   :  { %2361 = vmatpush1.bf16.msra.mxu1 %v2800_v38  ;;  %2377 = vmatpush1.bf16.msra.mxu0 %v2808_v45 }
 0x525   :  { %2379 = vmatprep.subr.bf16.mxu1 %v2743_v36  ;;  %2395 = vmatprep.subr.bf16.mxu0 %v2746_v39 }
 0x5ea   :  { %v1329_v29 = vpop.f32.mrb[8].mxu1  ;;  %v1400_v30 = vpop.f32.mrb[16].mxu0 }
 0x5eb   :  { %v2462_v32 = vadd.f32 %v1329_v29, %v2857_v61  ;;  %v1331_v34 = vpop.f32.mrb[9].mxu1  ;;  %v1402_v35 = vpop.f32.mrb[17].mxu0  ;;  %v2478_v44 = vadd.f32 %v1400_v30, %v2863_v13 }
 0x5ec   :  { %v2463_v37 = vadd.f32 %v1331_v34, %v2859_v62  ;;  %v2479_v46 = vadd.f32 %v1402_v35, %v2865_v14 }
 0x5ed   :  { %v2100_v42 = vmul.f32 -1.442695, %v2462_v32  ;;  %v2102_v47 = vmul.f32 -1.442695, %v2478_v44 }
 0x5ee   :  { %v2101_v43 = vmul.f32 -1.442695, %v2463_v37 }
 0x5ef   :  { %2588 = vpow2.f32 %v2100_v42 }
 0x5f0   :  { %2590 = vpow2.f32 %v2101_v43 }
 0x5f1   :  { %2592 = vtanh.f32 %v2479_v46 }
 0x5f2   :  { %2594 = vpow2.f32 %v2102_v47 }
 0x5f9   :  { %v2589_v48 = vpop.eup %2588 }
 0x5fa   :  { %v1418_v49 = vadd.f32 1.0, %v2589_v48  ;;  %v2591_v50 = vpop.eup %2590 }
 0x5fb   :  { %v1419_v51 = vadd.f32 1.0, %v2591_v50  ;;  %v2593_v52 = vpop.eup %2592 }
 0x5fc   :  { %2596 = vrcp.f32 %v1418_v49  ;;  %v2595_v54 = vpop.eup %2594 }
 0x5fd   :  { %2598 = vrcp.f32 %v1419_v51  ;;  %v1420_v58 = vadd.f32 1.0, %v2595_v54 }
 0x5ff   :  { %2600 = vrcp.f32 %v1420_v58  ;;  %v1965_v58 = vld [vmem:[#allocation3 + $0x220] sm:$0xff] }
 0x606   :  { %v2597_v40 = vpop.eup %2596 }
 0x607   :  { %v1429_v56 = vmul.f32 %v2597_v40, %v2593_v52  ;;  %v2599_v57 = vpop.eup %2598 }
 0x608   :  { %v1428_v59 = vmul.f32 %v2599_v57, %v1253_v22  ;;  %v1964_v57 = vld [vmem:[#allocation3 + $0x200] sm:$0xff] }
 0x609   :  { %v2601_v0 = vpop.eup %2600 }
 0x60a   :  { %v1430_v60 = vadd.f32 %v1429_v56, %v1428_v59  ;;  %v2443_v59 = vpack.c.bf16 %v1965_v58, %v1964_v57 }
 0x60c   :  { %2602 = vtanh.f32 %v1430_v60 }
 0x616   :  { %v2603_v1 = vpop.eup %2602 }
 0x617   :  { %v1432_v2 = vmul.f32 %v2603_v1, %v2601_v0  ;;  %v1966_v0 = vld [vmem:[#allocation3 + $0x240] sm:$0xff] }
 0x618   :  { %v1967_v1 = vld [vmem:[#allocation3 + $0x260] sm:$0xff] }
 0x619   :  { %2103 = vmatmul.mubr.msk.f32.vlgmr.msra.gmra.mrb[10].mxu1 %vm551_vm11, %v1432_v2  ;;  %2104 = vmatmul.mubr.msk.f32.vlgmr.msra.gmra.mrb[18].mxu0 %vm551_vm11, %v1432_v2  ;;  %v2446_v2 = vpack.c.bf16 %v1967_v1, %v1966_v0 }
 0x61a   :  { %2381 = vmatpush1.bf16.msra.mxu1 %v2753_v53  ;;  %2397 = vmatpush1.bf16.msra.mxu0 %v2758_v63 }
 0x61b   :  { %2383 = vmatprep.subr.bf16.mxu1 %v2755_v55  ;;  %2399 = vmatprep.subr.bf16.mxu0 %v2770_v10 }
 0x61c   :  { %1681 = vmatprep.mubr.f32.mxu1 %v2679_v33  ;;  %1752 = vmatprep.mubr.f32.mxu0 %v2679_v33 }
 0x61e   :  { %2385 = vmatpush1.bf16.msra.mxu1 %v2766_v6  ;;  %2401 = vmatpush1.bf16.msra.mxu0 %v2775_v15 }
 0x61f   :  { %2387 = vmatprep.subr.bf16.mxu1 %v2768_v7  ;;  %2403 = vmatprep.subr.bf16.mxu0 %v2787_v26 }
 0x622   :  { %2389 = vmatpush1.bf16.msra.mxu1 %v2782_v23  ;;  %2405 = vmatpush1.bf16.msra.mxu0 %v2793_v31 }
 0x623   :  { %2391 = vmatprep.subr.bf16.mxu1 %v2785_v24  ;;  %2407 = vmatprep.subr.bf16.mxu0 %v2803_v41 }
 0x626   :  { %2393 = vmatpush1.bf16.msra.mxu1 %v2800_v38  ;;  %2409 = vmatpush1.bf16.msra.mxu0 %v2808_v45 }
 0x627   :  { %2411 = vmatprep.subr.bf16.mxu1 %v2743_v36  ;;  %2427 = vmatprep.subr.bf16.mxu0 %v2746_v39 }
 0x6ec   :  { %v1506_v3 = vpop.f32.mrb[10].mxu1  ;;  %v1577_v4 = vpop.f32.mrb[18].mxu0 }
 0x6ed   :  { %v2464_v5 = vadd.f32 %v1506_v3, %v2857_v61  ;;  %v1508_v8 = vpop.f32.mrb[11].mxu1  ;;  %v1579_v9 = vpop.f32.mrb[19].mxu0  ;;  %v2480_v17 = vadd.f32 %v1577_v4, %v2863_v13  ;;  %v1968_v3 = vld [vmem:[#allocation3 + $0x280] sm:$0xff] }
 0x6ee   :  { %v2465_v11 = vadd.f32 %v1508_v8, %v2859_v62  ;;  %v2481_v18 = vadd.f32 %v1579_v9, %v2865_v14  ;;  %v1969_v4 = vld [vmem:[#allocation3 + $0x2a0] sm:$0xff] }
 0x6ef   :  { %v2105_v12 = vmul.f32 -1.442695, %v2464_v5  ;;  %v2107_v19 = vmul.f32 -1.442695, %v2480_v17  ;;  %v2449_v5 = vpack.c.bf16 %v1969_v4, %v1968_v3  ;;  %v1970_v8 = vld [vmem:[#allocation3 + $0x2c0] sm:$0xff] }
 0x6f0   :  { %v2106_v16 = vmul.f32 -1.442695, %v2465_v11  ;;  %v1971_v9 = vld [vmem:[#allocation3 + $0x2e0] sm:$0xff] }
 0x6f1   :  { %2604 = vpow2.f32 %v2105_v12  ;;  %v2452_v11 = vpack.c.bf16 %v1971_v9, %v1970_v8 }
 0x6f2   :  { %2606 = vpow2.f32 %v2106_v16 }
 0x6f3   :  { %2608 = vtanh.f32 %v2481_v18 }
 0x6f4   :  { %2610 = vpow2.f32 %v2107_v19 }
 0x6fb   :  { %v2605_v36 = vpop.eup %2604 }
 0x6fc   :  { %v1595_v20 = vadd.f32 1.0, %v2605_v36  ;;  %v2607_v39 = vpop.eup %2606 }
 0x6fd   :  { %v1596_v21 = vadd.f32 1.0, %v2607_v39  ;;  %v2609_v22 = vpop.eup %2608 }
 0x6fe   :  { %2612 = vrcp.f32 %v1595_v20  ;;  %v2611_v25 = vpop.eup %2610 }
 0x6ff   :  { %2614 = vrcp.f32 %v1596_v21  ;;  %v1597_v30 = vadd.f32 1.0, %v2611_v25 }
 0x701   :  { %2616 = vrcp.f32 %v1597_v30 }
 0x708   :  { %v2613_v27 = vpop.eup %2612 }
 0x709   :  { %v1606_v28 = vmul.f32 %v2613_v27, %v2609_v22  ;;  %v2615_v29 = vpop.eup %2614 }
 0x70a   :  { %v1605_v32 = vmul.f32 %v2615_v29, %v1430_v60  ;;  %v2680_v60 = vmov 0.0|0.0  }
 0x70b   :  { %v2617_v35 = vpop.eup %2616 }
 0x70c   :  { %v1607_v34 = vadd.f32 %v1606_v28, %v1605_v32 }
 0x70e   :  { %2618 = vtanh.f32 %v1607_v34 }
 0x718   :  { %v2619_v37 = vpop.eup %2618 }
 0x719   :  { %v1609_v42 = vmul.f32 %v2619_v37, %v2617_v35 }
 0x71b   :  { %2108 = vmatmul.mubr.msk.f32.vlgmr.msra.gmra.mrb[12].mxu1 %vm551_vm11, %v1609_v42  ;;  %2109 = vmatmul.mubr.msk.f32.vlgmr.msra.gmra.mrb[20].mxu0 %vm551_vm11, %v1609_v42 }
 0x71c   :  { %2413 = vmatpush1.bf16.msra.mxu1 %v2753_v53  ;;  %2429 = vmatpush1.bf16.msra.mxu0 %v2758_v63 }
 0x71d   :  { %2415 = vmatprep.subr.bf16.mxu1 %v2755_v55  ;;  %2431 = vmatprep.subr.bf16.mxu0 %v2770_v10 }
 0x71e   :  { %1858 = vmatprep.mubr.f32.mxu1 %v2679_v33  ;;  %1929 = vmatprep.mubr.f32.mxu0 %v2679_v33 }
 0x720   :  { %2417 = vmatpush1.bf16.msra.mxu1 %v2766_v6  ;;  %2433 = vmatpush1.bf16.msra.mxu0 %v2775_v15 }
 0x721   :  { %2419 = vmatprep.subr.bf16.mxu1 %v2768_v7  ;;  %2435 = vmatprep.subr.bf16.mxu0 %v2787_v26 }
 0x724   :  { %2421 = vmatpush1.bf16.msra.mxu1 %v2782_v23  ;;  %2437 = vmatpush1.bf16.msra.mxu0 %v2793_v31 }
 0x725   :  { %2423 = vmatprep.subr.bf16.mxu1 %v2785_v24  ;;  %2439 = vmatprep.subr.bf16.mxu0 %v2803_v41 }
 0x728   :  { %2425 = vmatpush1.bf16.msra.mxu1 %v2800_v38  ;;  %2441 = vmatpush1.bf16.msra.mxu0 %v2808_v45 }
 0x729   :  { %2442 = vmatprep.subr.bf16.mxu1 %v2680_v60 }
 0x7ee   :  { %v1683_v53 = vpop.f32.mrb[12].mxu1  ;;  %v1754_v55 = vpop.f32.mrb[20].mxu0 }
 0x7ef   :  { %v2466_v63 = vadd.f32 %v1683_v53, %v2857_v61  ;;  %v1685_v6 = vpop.f32.mrb[13].mxu1  ;;  %v1756_v7 = vpop.f32.mrb[21].mxu0  ;;  %v2482_v24 = vadd.f32 %v1754_v55, %v2863_v13  ;;  %v1972_v55 = vld [vmem:[#allocation3 + $0x1e0] ss:$0 sm:$0xff] }
 0x7f0   :  { %v2467_v10 = vadd.f32 %v1685_v6, %v2859_v62  ;;  %v2483_v26 = vadd.f32 %v1756_v7, %v2865_v14 }
 0x7f1   :  { %v2110_v15 = vmul.f32 -1.442695, %v2466_v63  ;;  %v2112_v31 = vmul.f32 -1.442695, %v2482_v24 }
 0x7f2   :  { %v2111_v23 = vmul.f32 -1.442695, %v2467_v10 }
 0x7f3   :  { %2620 = vpow2.f32 %v2110_v15 }
 0x7f4   :  { %2622 = vpow2.f32 %v2111_v23 }
 0x7f5   :  { %2624 = vtanh.f32 %v2483_v26 }
 0x7f6   :  { %2626 = vpow2.f32 %v2112_v31 }
 0x7fd   :  { %v2621_v38 = vpop.eup %2620 }
 0x7fe   :  { %v1772_v41 = vadd.f32 1.0, %v2621_v38  ;;  %v2623_v45 = vpop.eup %2622 }
 0x7ff   :  { %v1773_v43 = vadd.f32 1.0, %v2623_v45  ;;  %v2625_v44 = vpop.eup %2624 }
 0x800   :  { %2628 = vrcp.f32 %v1772_v41  ;;  %v2627_v46 = vpop.eup %2626 }
 0x801   :  { %2630 = vrcp.f32 %v1773_v43  ;;  %v1774_v50 = vadd.f32 1.0, %v2627_v46 }
 0x803   :  { %2632 = vrcp.f32 %v1774_v50 }
 0x80a   :  { %v2629_v47 = vpop.eup %2628 }
 0x80b   :  { %v1783_v48 = vmul.f32 %v2629_v47, %v2625_v44  ;;  %v2631_v49 = vpop.eup %2630 }
 0x80c   :  { %v1782_v51 = vmul.f32 %v2631_v49, %v1607_v34 }
 0x80d   :  { %v2633_v54 = vpop.eup %2632 }
 0x80e   :  { %v1784_v52 = vadd.f32 %v1783_v48, %v1782_v51 }
 0x810   :  { %2634 = vtanh.f32 %v1784_v52 }
 0x81a   :  { %v2635_v40 = vpop.eup %2634 }
 0x81b   :  { %v1786_v56 = vmul.f32 %v2635_v40, %v2633_v54 }
 0x81d   :  { %2113 = vmatmul.mubr.msk.f32.vlgmr.msra.gmra.mrb[14].mxu1 %vm551_vm11, %v1786_v56  ;;  %2114 = vmatmul.mubr.msk.f32.vlgmr.msra.gmra.mrb[22].mxu0 %vm551_vm11, %v1786_v56 }
 0x81e   :  { %2444 = vmatpush3.bf16.msra.mxu1 %v2443_v59  ;;  %2167 = vmatprep.mubr.msk.f32.mxu1 %vm2681_vm12, %v2679_v33 }
 0x81f   :  { %2445 = vmatprep.subr.bf16.mxu1 %v2680_v60 }
 0x822   :  { %2447 = vmatpush3.bf16.msra.mxu1 %v2446_v2 }
 0x823   :  { %2448 = vmatprep.subr.bf16.mxu1 %v2680_v60 }
 0x826   :  { %2450 = vmatpush3.bf16.msra.mxu1 %v2449_v5 }
 0x827   :  { %2451 = vmatprep.subr.bf16.mxu1 %v2680_v60 }
 0x82a   :  { %2453 = vmatpush3.bf16.msra.mxu1 %v2452_v11 }
 0x8f0   :  { %v1860_v12 = vpop.f32.mrb[14].mxu1  ;;  %v1931_v16 = vpop.f32.mrb[22].mxu0 }
 0x8f1   :  { %v2468_v17 = vadd.f32 %v1860_v12, %v2857_v61  ;;  %v1862_v18 = vpop.f32.mrb[15].mxu1  ;;  %v1933_v19 = vpop.f32.mrb[23].mxu0  ;;  %v2484_v33 = vadd.f32 %v1931_v16, %v2863_v13 }
 0x8f2   :  { %v2469_v36 = vadd.f32 %v1862_v18, %v2859_v62  ;;  %v2485_v21 = vadd.f32 %v1933_v19, %v2865_v14 }
 0x8f3   :  { %v2115_v20 = vmul.f32 -1.442695, %v2468_v17  ;;  %v2117_v22 = vmul.f32 -1.442695, %v2484_v33 }
 0x8f4   :  { %v2116_v39 = vmul.f32 -1.442695, %v2469_v36 }
 0x8f5   :  { %2636 = vpow2.f32 %v2115_v20 }
 0x8f6   :  { %2638 = vpow2.f32 %v2116_v39 }
 0x8f7   :  { %2640 = vtanh.f32 %v2485_v21 }
 0x8f8   :  { %2642 = vpow2.f32 %v2117_v22 }
 0x8ff   :  { %v2637_v25 = vpop.eup %2636 }
 0x900   :  { %v1949_v27 = vadd.f32 1.0, %v2637_v25  ;;  %v2639_v28 = vpop.eup %2638 }
 0x901   :  { %v1950_v61 = vadd.f32 1.0, %v2639_v28  ;;  %v2641_v29 = vpop.eup %2640 }
 0x902   :  { %2644 = vrcp.f32 %v1949_v27  ;;  %v2643_v30 = vpop.eup %2642 }
 0x903   :  { %2646 = vrcp.f32 %v1950_v61  ;;  %v1951_v35 = vadd.f32 1.0, %v2643_v30 }
 0x905   :  { %2648 = vrcp.f32 %v1951_v35 }
 0x90c   :  { %v2645_v62 = vpop.eup %2644 }
 0x90d   :  { %v1960_v32 = vmul.f32 %v2645_v62, %v2641_v29  ;;  %v2647_v34 = vpop.eup %2646 }
 0x90e   :  { %v1959_v37 = vmul.f32 %v2647_v34, %v1784_v52 }
 0x90f   :  { %v2649_v13 = vpop.eup %2648 }
 0x910   :  { %v1961_v42 = vadd.f32 %v1960_v32, %v1959_v37 }
 0x912   :  { %2650 = vtanh.f32 %v1961_v42 }
 0x91c   :  { %v2651_v14 = vpop.eup %2650 }
 0x91d   :  { %v1963_v53 = vmul.f32 %v2651_v14, %v2649_v13 }
 0x91f   :  { %2168 = vmatmul.mubr.msk.f32.vlgmr.msra.gmra.mrb[16].mxu1 %vm551_vm11, %v1963_v53 }
 0x9f2   :  { %v2042_v63 = vpop.f32.mrb[16].mxu1 }
 0x9f3   :  { %v2043_v6 = vadd.f32 %v2042_v63, %v1972_v55  ;;  %v2169_v7 = vpop.f32.mrb[17].mxu1 }
 0x9f5   :  { %vm2046_vm13 = vcmp.ge.f32.partialorder %v2043_v6, 0.0  ;;  %v2047_v10 = vmul.f32 0.1, %v2043_v6 }
 0x9f7   :  { %v2048_v15 = vsel %vm2046_vm13, %v2043_v6, %v2047_v10 }
 0x9f8   :  { %2049 = vst.msk [vmem:[%s3025_s2] sm:$0xff] %vm232_vm3, %v2048_v15 }
 0x9f9   :  { %2054 = vsyncpa [#allocation4], 1 }

</bundles_post_ra>
